<compile_context>
chip_gen: v6e
topology: v6e:2x2x1
jax: 0.10.0
libtpu: 0.0.40
codegen_flags: <defaults>
</compile_context>

<pallas_src>
import jax
import jax.numpy as jnp
from jax.experimental import pallas as pl
from jax.experimental.pallas import tpu as pltpu

LANE = 128
MAX_TILE_ELEMS = 512 * 1024  # per-input tile elems per grid step (2 MiB f32)


def _plan(n):
    """Pick (lanes, rows, tm) so the flat length-n array reshapes (preferably
    pad-free) into a lane-dense slab [rows, lanes] tiled in tm-row blocks."""
    lanes = LANE
    for w in (4096, 2048, 1024, 512, 256, 128):
        if w <= n and n % w == 0:
            lanes = w
            break
    rows = -(-n // lanes)
    max_tm = max(8, (MAX_TILE_ELEMS // lanes) // 8 * 8)
    if rows <= max_tm:
        tm = rows  # one row-block covers the whole slab (block == full dim)
    else:
        tm = 0
        t = max_tm
        while t >= 8:  # largest multiple-of-8 divisor of rows within budget
            if rows % t == 0:
                tm = t
                break
            t -= 8
        if tm == 0:  # no clean divisor: round rows up to a tile multiple
            tm = max_tm
            rows = -(-rows // tm) * tm
    return lanes, rows, tm


def _to_slab(x, lanes, rows):
    """Flatten to [rows, lanes]; pads only when the shape is not tile-friendly."""
    flat = x.reshape(-1)
    pad = rows * lanes - flat.shape[0]
    if pad:
        flat = jnp.pad(flat, (0, pad))
    return flat.reshape(rows, lanes)


# -----------------------------------------------------------------------------
# reduction='mean': per-step elementwise accumulate, single reduction at end.
# grid = (splits, blocks_per_split); outer axis is "parallel" (megacore).
# -----------------------------------------------------------------------------
def _mse_mean_kernel(x_ref, y_ref, o_ref, acc_ref):
    j = pl.program_id(1)

    @pl.when(j == 0)
    def _():
        acc_ref[...] = jnp.zeros_like(acc_ref)

    d = x_ref[...].astype(jnp.float32) - y_ref[...].astype(jnp.float32)
    acc_ref[...] += d * d  # pure VPU; no per-step cross-lane reduction

    @pl.when(j == pl.num_programs(1) - 1)
    def _():
        o_ref[...] = jnp.sum(acc_ref[...]).reshape(1, 1, 1)


# -----------------------------------------------------------------------------
# reduction='none': elementwise squared difference, lane-dense output stores.
# -----------------------------------------------------------------------------
def _mse_none_kernel(x_ref, y_ref, o_ref):
    d = x_ref[...].astype(jnp.float32) - y_ref[...].astype(jnp.float32)
    o_ref[...] = (d * d).astype(o_ref.dtype)


def mse_loss(inputs, targets, reduction="mean"):
    assert inputs.shape == targets.shape
    n = 1
    for s in inputs.shape:
        n *= s

    lanes, rows, tm = _plan(n)
    x2d = _to_slab(inputs, lanes, rows)
    y2d = _to_slab(targets, lanes, rows)
    blocks = rows // tm

    if reduction == "mean":
        # Split the reduction across (up to) 2 cores when the block count allows.
        splits = 2 if (blocks >= 2 and blocks % 2 == 0) else 1
        bps = blocks // splits

        partials = pl.pallas_call(
            _mse_mean_kernel,
            out_shape=jax.ShapeDtypeStruct((splits, 1, 1), jnp.float32),
            grid_spec=pltpu.PrefetchScalarGridSpec(
                num_scalar_prefetch=0,
                grid=(splits, bps),
                in_specs=[
                    pl.BlockSpec((tm, lanes), lambda c, j: (c * bps + j, 0)),
                    pl.BlockSpec((tm, lanes), lambda c, j: (c * bps + j, 0)),
                ],
                out_specs=pl.BlockSpec((1, 1, 1), lambda c, j: (c, 0, 0)),
                scratch_shapes=[pltpu.VMEM((tm, lanes), jnp.float32)],
            ),
            compiler_params=pltpu.CompilerParams(
                dimension_semantics=("parallel", "arbitrary"),
                vmem_limit_bytes=32 * 1024 * 1024,
            ),
        )(x2d, y2d)
        # zero-padded elements (if any) contribute 0 to the sum; divide by true N.
        return (jnp.sum(partials) / n).astype(inputs.dtype)

    else:  # reduction == 'none' — elementwise (x - y)^2, original shape/dtype
        out2d = pl.pallas_call(
            _mse_none_kernel,
            out_shape=jax.ShapeDtypeStruct((rows, lanes), inputs.dtype),
            grid_spec=pltpu.PrefetchScalarGridSpec(
                num_scalar_prefetch=0,
                grid=(blocks,),
                in_specs=[
                    pl.BlockSpec((tm, lanes), lambda i: (i, 0)),
                    pl.BlockSpec((tm, lanes), lambda i: (i, 0)),
                ],
                out_specs=pl.BlockSpec((tm, lanes), lambda i: (i, 0)),
            ),
            compiler_params=pltpu.CompilerParams(
                dimension_semantics=("parallel",),
                vmem_limit_bytes=32 * 1024 * 1024,
            ),
        )(x2d, y2d)
        flat = out2d.reshape(-1)
        if rows * lanes != n:
            flat = flat[:n]
        return flat.reshape(inputs.shape)


if __name__ == "__main__":
    key = jax.random.PRNGKey(0)
    k1, k2 = jax.random.split(key)
    # NCHW-shaped example inputs, consistent with a dense-prediction loss.
    x = jax.random.normal(k1, (2, 4, 16, 16), dtype=jnp.float32)
    t = jax.random.normal(k2, (2, 4, 16, 16), dtype=jnp.float32)

    # reduction='mean' (module default)
    loss = jax.block_until_ready(mse_loss(x, t, reduction="mean"))
    ref = jnp.mean((x - t) ** 2)
    assert jnp.allclose(loss, ref, rtol=1e-5, atol=1e-6), (loss, ref)

    # reduction='none' path also exercised
    elem = jax.block_until_ready(mse_loss(x, t, reduction="none"))
    assert jnp.allclose(elem, (x - t) ** 2, rtol=1e-5, atol=1e-6)

    print("KERNEL_OK")
</pallas_src>

<mosaic_0001>
module attributes {stable_mosaic.version = 11 : i64} {
  func.func @_mse_mean_kernel(%arg0: i32, %arg1: i32, %arg2: memref<1x2048xf32, #tpu.memory_space<vmem>>, %arg3: memref<1x2048xf32, #tpu.memory_space<vmem>>, %arg4: memref<1x1x1xf32, #tpu.memory_space<vmem>>, %arg5: memref<1x2048xf32, #tpu.memory_space<vmem>>) attributes {dimension_semantics = [#tpu.dimension_semantics<parallel>, #tpu.dimension_semantics<arbitrary>], iteration_bounds = array<i64: 1, 1>, scalar_prefetch = 0 : i64, scratch_operands = 1 : i64, tpu.core_type = #tpu.core_type<tc>, window_params = [{transform_indices = @transform_0, window_bounds = array<i64: 1, 2048>}, {transform_indices = @transform_1, window_bounds = array<i64: 1, 2048>}, {transform_indices = @transform_2, window_bounds = array<i64: 1, 1, 1>}]} {
    %c0_i32 = arith.constant 0 : i32
    %0 = arith.cmpi eq, %arg1, %c0_i32 : i32
    %1 = arith.extui %0 : i1 to i32
    %c0_i32_0 = arith.constant 0 : i32
    %2 = arith.cmpi ne, %1, %c0_i32_0 : i32
    scf.if %2 {
      %cst = arith.constant 0.000000e+00 : f32
      %13 = vector.broadcast %cst : f32 to vector<1x2048xf32>
      %c0_10 = arith.constant 0 : index
      %c0_11 = arith.constant 0 : index
      %14 = vector.load %arg5[%c0_10, %c0_11] : memref<1x2048xf32, #tpu.memory_space<vmem>>, vector<1x2048xf32>
      tpu.vector_store %arg5[%c0_10, %c0_11], %13 {strides = array<i32>} : memref<1x2048xf32, #tpu.memory_space<vmem>>, vector<1x2048xf32>,
    } else {
    }
    %c0 = arith.constant 0 : index
    %c0_1 = arith.constant 0 : index
    %3 = vector.load %arg2[%c0, %c0_1] : memref<1x2048xf32, #tpu.memory_space<vmem>>, vector<1x2048xf32>
    %c0_2 = arith.constant 0 : index
    %c0_3 = arith.constant 0 : index
    %4 = vector.load %arg3[%c0_2, %c0_3] : memref<1x2048xf32, #tpu.memory_space<vmem>>, vector<1x2048xf32>
    %5 = arith.subf %3, %4 : vector<1x2048xf32>
    %c0_4 = arith.constant 0 : index
    %c0_5 = arith.constant 0 : index
    %6 = vector.load %arg5[%c0_4, %c0_5] : memref<1x2048xf32, #tpu.memory_space<vmem>>, vector<1x2048xf32>
    %7 = arith.mulf %5, %5 : vector<1x2048xf32>
    %8 = arith.addf %6, %7 : vector<1x2048xf32>
    %c0_6 = arith.constant 0 : index
    %c0_7 = arith.constant 0 : index
    %9 = vector.load %arg5[%c0_6, %c0_7] : memref<1x2048xf32, #tpu.memory_space<vmem>>, vector<1x2048xf32>
    tpu.vector_store %arg5[%c0_6, %c0_7], %8 {strides = array<i32>} : memref<1x2048xf32, #tpu.memory_space<vmem>>, vector<1x2048xf32>,
    %c0_i32_8 = arith.constant 0 : i32
    %10 = arith.cmpi eq, %arg1, %c0_i32_8 : i32
    %11 = arith.extui %10 : i1 to i32
    %c0_i32_9 = arith.constant 0 : i32
    %12 = arith.cmpi ne, %11, %c0_i32_9 : i32
    scf.if %12 {
      %c0_10 = arith.constant 0 : index
      %c0_11 = arith.constant 0 : index
      %13 = vector.load %arg5[%c0_10, %c0_11] : memref<1x2048xf32, #tpu.memory_space<vmem>>, vector<1x2048xf32>
      %14 = vector.shape_cast %13 : vector<1x2048xf32> to vector<1x1x2048xf32>
      %cst = arith.constant dense<0.000000e+00> : vector<1xf32>
      %15 = vector.multi_reduction <add>, %14, %cst [1, 2] : vector<1x1x2048xf32> to vector<1xf32>
      %16 = vector.shape_cast %15 : vector<1xf32> to vector<1x1x1xf32>
      %17 = vector.extract %16[0, 0, 0] : f32 from vector<1x1x1xf32>
      %18 = vector.broadcast %17 : f32 to vector<1x1x1xf32>
      %c0_12 = arith.constant 0 : index
      %c0_13 = arith.constant 0 : index
      %c0_14 = arith.constant 0 : index
      %19 = vector.load %arg4[%c0_12, %c0_13, %c0_14] : memref<1x1x1xf32, #tpu.memory_space<vmem>>, vector<1x1x1xf32>
      tpu.vector_store %arg4[%c0_12, %c0_13, %c0_14], %18 {strides = array<i32>} : memref<1x1x1xf32, #tpu.memory_space<vmem>>, vector<1x1x1xf32>,
    } else {
    }
    return
  }
  func.func @transform_0(%arg0: i32, %arg1: i32) -> (i32, i32) {
    %c1_i32 = arith.constant 1 : i32
    %0 = arith.muli %arg0, %c1_i32 : i32
    %1 = arith.addi %0, %arg1 : i32
    %c0_i32 = arith.constant 0 : i32
    %c0_i32_0 = arith.constant 0 : i32
    return %1, %c0_i32 : i32, i32
  }
  func.func @transform_1(%arg0: i32, %arg1: i32) -> (i32, i32) {
    %c1_i32 = arith.constant 1 : i32
    %0 = arith.muli %arg0, %c1_i32 : i32
    %1 = arith.addi %0, %arg1 : i32
    %c0_i32 = arith.constant 0 : i32
    %c0_i32_0 = arith.constant 0 : i32
    return %1, %c0_i32 : i32, i32
  }
  func.func @transform_2(%arg0: i32, %arg1: i32) -> (i32, i32, i32) {
    %c0_i32 = arith.constant 0 : i32
    %c0_i32_0 = arith.constant 0 : i32
    %c0_i32_1 = arith.constant 0 : i32
    return %arg0, %c0_i32, %c0_i32_0 : i32, i32, i32
  }
}

</mosaic_0001>

<bundles_post_ra>
// kernel: tpu_custom_call.1
= control target key start
LH: loop header
LB: loop body
LE: loop exit
PB: predicated region body
PF: predicated region fallthrough
CT: control target
= control target key end

     0   :  { %7 = vsyncpa [#allocation4], 0  ;;  %s327_s0 = inlined_call_operand.hbm [shape: f32[1,2048], index: 0, kind: input, shape index: {}]   ;;  %s328_s1 = inlined_call_operand.hbm [shape: f32[1,2048], index: 1, kind: input, shape index: {}]   ;;  %s329_s2 = inlined_call_operand.hbm [shape: f32[1,1,1], index: 2, kind: output, shape index: {}]  }
   0x1   :  { %8 = vsyncpa [#allocation7], 0 }
   0x2   :  { %9 = vsyncpa [#allocation5], 0  ;;  %s284_s9 = smov [#allocation3]   ;;  %s285_s11 = smov [#allocation6]  }
   0x3   :  { %s20_s10 = sshll.u32 %s284_s9, 4  ;;  %s34_s12 = sshll.u32 %s285_s11, 4  ;;  %s21_s10 = int_to_ptr.vmem [resolvable:$true] %s20_s10  ;;  %s35_s12 = int_to_ptr.vmem [resolvable:$true] %s34_s12 }
   0x4   :  { %s226_s13 = scalar_lea.vmem %s21_s10, 256  ;;  %p231_p1 = scmp.lt.s32.totalorder %s21_s10, %s21_s10 }
   0x5   :  { %p227_p0 = scmp.ne.s32.totalorder %s21_s10, %s226_s13  ;;  %p232_p2 = scmp.lt.s32.totalorder %s226_s13, %s226_s13 }
   0x7   :  { %p233_p3 = por %p232_p2, %p231_p1 }
   0x9   :  { %p234_p4 = pnand %p233_p3, %p227_p0 }
   0xb   :  { %237 = shalt.err (!%p234_p4)
}
   0xc   :  { %23 = dma.hbm_to_vmem [thread:$0]  %s327_s0, 256, %s21_s10, [#allocation4]  }
   0xd   :  { %s246_s16 = scalar_lea.vmem %s35_s12, 256  ;;  %p251_p6 = scmp.lt.s32.totalorder %s35_s12, %s35_s12 }
   0xe   :  { %p247_p5 = scmp.ne.s32.totalorder %s35_s12, %s246_s16  ;;  %p252_p7 = scmp.lt.s32.totalorder %s246_s16, %s246_s16 }
  0x10   :  { %p253_p8 = por %p252_p7, %p251_p6 }
  0x12   :  { %p254_p9 = pnand %p253_p8, %p247_p5 }
  0x14   :  { %257 = shalt.err (!%p254_p9)
}
  0x15   :  { %37 = dma.hbm_to_vmem [thread:$0]  %s328_s1, 256, %s35_s12, [#allocation7]  }
  0x16   :  { %278 = dma.done.wait [#allocation4], 256  }
  0x17   :  { %279 = vsyncadd [#allocation4], 4294967040 }
  0x18   :  { %280 = dma.done.wait [#allocation7], 256  }
  0x19   :  { %281 = vsyncadd [#allocation7], 4294967040  ;;  %v73_v0 = vlaneseq  ;;  %v52_v2 = vld [vmem:[#allocation3] sm:$0xff]  ;;  %v54_v3 = vld [vmem:[#allocation6] sm:$0xff]  ;;  %vm153_vm0 = vcmask 1040384   ;;  %s286_s0 = smov [#allocation8]  }
  0x1a   :  { %v56_v4 = vsub.f32 %v52_v2, %v54_v3  ;;  %v53_v10 = vld [vmem:[#allocation3 + $0x8] sm:$0xff]  ;;  %v55_v11 = vld [vmem:[#allocation6 + $0x8] sm:$0xff]  ;;  %s203_s1 = sshll.u32 %s286_s0, 4  ;;  %vm195_vm1 = vcmask 0   ;;  %s204_s1 = int_to_ptr.vmem [resolvable:$true] %s203_s1 }
  0x1b   :  { %v74_v1 = vshrl.u32 %v73_v0, 7  ;;  %v57_v18 = vsub.f32 %v53_v10, %v55_v11  ;;  %s258_s20 = scalar_lea.vmem %s204_s1, 16  ;;  %s262_s21 = scalar_lea.vmem %s204_s1, 32 }
  0x1c   :  { %v60_v8 = vmul.f32 %v56_v4, %v56_v4  ;;  %p259_p10 = scmp.ne.s32.totalorder %s204_s1, %s258_s20  ;;  %p263_p11 = scmp.lt.s32.totalorder %s204_s1, %s204_s1 }
  0x1d   :  { %v75_v5 = vsub.s32 0, %v74_v1  ;;  %v79_v6 = vsub.s32 1, %v74_v1  ;;  %v83_v7 = vsub.s32 2, %v74_v1  ;;  %v87_v9 = vsub.s32 3, %v74_v1  ;;  %p264_p12 = scmp.lt.s32.totalorder %s262_s21, %s258_s20 }
  0x1e   :  { %v91_v15 = vsub.s32 4, %v74_v1  ;;  %v95_v17 = vsub.s32 5, %v74_v1  ;;  %v99_v19 = vsub.s32 6, %v74_v1  ;;  %v103_v26 = vsub.s32 7, %v74_v1 }
  0x1f   :  { %v76_v12 = vrot.slane %v60_v8, %v75_v5  ;;  %v80_v13 = vrot.slane %v60_v8, %v79_v6  ;;  %v84_v14 = vrot.slane %v60_v8, %v83_v7  ;;  %v88_v16 = vrot.slane %v60_v8, %v87_v9  ;;  %p265_p13 = por %p264_p12, %p263_p11 }
  0x20   :  { %v92_v20 = vrot.slane %v60_v8, %v91_v15  ;;  %v96_v25 = vrot.slane %v60_v8, %v95_v17  ;;  %v61_v29 = vmul.f32 %v57_v18, %v57_v18  ;;  %v100_v30 = vrot.slane %v60_v8, %v99_v19 }
  0x21   :  { %v154_v21 = vsel %vm153_vm0, %v76_v12, 0.0  ;;  %v155_v22 = vsel %vm153_vm0, %v80_v13, 0.0  ;;  %v157_v23 = vsel %vm153_vm0, %v84_v14, 0.0  ;;  %v159_v27 = vsel %vm153_vm0, %v88_v16, 0.0  ;;  %p266_p0 = pnand %p265_p13, %p259_p10 }
  0x22   :  { %v156_v24 = vadd.f32 %v155_v22, %v154_v21  ;;  %v161_v31 = vsel %vm153_vm0, %v92_v20, 0.0  ;;  %v104_v33 = vrot.slane %v60_v8, %v103_v26  ;;  %v163_v34 = vsel %vm153_vm0, %v96_v25, 0.0 }
  0x23   :  { %v108_v36 = vrot.slane %v61_v29, %v75_v5  ;;  %v165_v37 = vsel %vm153_vm0, %v100_v30, 0.0  ;;  %v112_v39 = vrot.slane %v61_v29, %v79_v6  ;;  %v116_v42 = vrot.slane %v61_v29, %v83_v7 }
  0x24   :  { %v158_v28 = vadd.f32 %v157_v23, %v156_v24  ;;  %v167_v40 = vsel %vm153_vm0, %v104_v33, 0.0  ;;  %v120_v45 = vrot.slane %v61_v29, %v87_v9  ;;  %v124_v48 = vrot.slane %v61_v29, %v91_v15 }
  0x25   :  { %v169_v43 = vsel %vm153_vm0, %v108_v36, 0.0  ;;  %v171_v46 = vsel %vm153_vm0, %v112_v39, 0.0  ;;  %v173_v49 = vsel %vm153_vm0, %v116_v42, 0.0  ;;  %v128_v51 = vrot.slane %v61_v29, %v95_v17 }
  0x26   :  { %v160_v32 = vadd.f32 %v159_v27, %v158_v28  ;;  %v175_v52 = vsel %vm153_vm0, %v120_v45, 0.0  ;;  %v132_v54 = vrot.slane %v61_v29, %v99_v19  ;;  %v177_v55 = vsel %vm153_vm0, %v124_v48, 0.0 }
  0x27   :  { %v136_v57 = vrot.slane %v61_v29, %v103_v26  ;;  %v179_v58 = vsel %vm153_vm0, %v128_v51, 0.0 }
  0x28   :  { %v162_v35 = vadd.f32 %v161_v31, %v160_v32  ;;  %v181_v60 = vsel %vm153_vm0, %v132_v54, 0.0 }
  0x29   :  { %v183_v62 = vsel %vm153_vm0, %v136_v57, 0.0 }
  0x2a   :  { %v164_v38 = vadd.f32 %v163_v34, %v162_v35 }
  0x2c   :  { %v166_v41 = vadd.f32 %v165_v37, %v164_v38 }
  0x2e   :  { %v168_v44 = vadd.f32 %v167_v40, %v166_v41 }
  0x30   :  { %v170_v47 = vadd.f32 %v169_v43, %v168_v44 }
  0x32   :  { %v172_v50 = vadd.f32 %v171_v46, %v170_v47 }
  0x34   :  { %v174_v53 = vadd.f32 %v173_v49, %v172_v50 }
  0x36   :  { %v176_v56 = vadd.f32 %v175_v52, %v174_v53 }
  0x38   :  { %v178_v59 = vadd.f32 %v177_v55, %v176_v56 }
  0x3a   :  { %v180_v61 = vadd.f32 %v179_v58, %v178_v59 }
  0x3c   :  { %v182_v63 = vadd.f32 %v181_v60, %v180_v61 }
  0x3e   :  { %v184_v0 = vadd.f32 %v183_v62, %v182_v63 }
  0x40   :  { %185 = vadd.xlane.f32.xlu0 %v184_v0 }
  0xc9   :  { %v186_v1 = vpop.xlane.xlu0 %185 }
  0xca   :  { %v187_v2 = vrot.slane %v186_v1, 4 }
  0xcc   :  { %v188_v3 = vadd.f32 %v187_v2, %v186_v1 }
  0xce   :  { %v189_v4 = vrot.slane %v188_v3, 2 }
  0xd0   :  { %v190_v5 = vadd.f32 %v189_v4, %v188_v3 }
  0xd2   :  { %v191_v6 = vrot.slane %v190_v5, 1 }
  0xd4   :  { %v192_v7 = vadd.f32 %v191_v6, %v190_v5 }
  0xd6   :  { %213 = vpush %v192_v7 }
 0x107   :  { %s214_s19 = spop %213 }
 0x108   :  { %v194_v8 = vstv %s214_s19 }
 0x109   :  { %196 = vst.msk [vmem:[#allocation8] sm:$0x1] %vm195_vm1, %v194_v8 }
 0x10a   :  { %269 = shalt.err (!%p266_p0)
}
 0x10b   :  { %206 = dma.vmem_to_hbm [thread:$0]  %s204_s1, 16, %s329_s2, [#allocation5]  }
 0x10c   :  { %282 = dma.done.wait [#allocation5], 16  }
 0x10d   :  { %283 = vsyncadd [#allocation5], 4294967280 }
 0x10e   :  { %210 = vsyncpa [#allocation4], 1 }
 0x10f   :  { %211 = vsyncpa [#allocation7], 1 }
 0x110   :  { %212 = vsyncpa [#allocation5], 1 }

</bundles_post_ra>
